<compile_context>
chip_gen: v5e
topology: v5e:2x2
jax: 0.10.0
libtpu: 0.0.40
codegen_flags: <defaults>
</compile_context>

<pallas_src>
import functools

import jax
import jax.numpy as jnp
from jax.experimental import pallas as pl
from jax.experimental.pallas import tpu as pltpu


# ----------------------------- Pallas kernels -----------------------------

def _qkv_kan_kernel(x_ref, w1_ref, w2_ref, o_ref):
    """Fused Q/K/V KANLinear: one activation pass, one wide matmul pair."""
    x = x_ref[...].astype(jnp.float32)
    silu = x * (1.0 / (1.0 + jnp.exp(-x)))          # SiLU (base branch)
    lrelu = jnp.where(x >= 0.0, x, 0.01 * x)        # LeakyReLU(0.01) (spline branch)
    o_ref[...] = (
        jnp.dot(silu, w1_ref[...], preferred_element_type=jnp.float32)
        + jnp.dot(lrelu, w2_ref[...], preferred_element_type=jnp.float32)
    )


def _attention_kernel(q_ref, k_ref, v_ref, ctx_ref, attn_ref, *, scale):
    """All heads in one step: batched einsums over (B*H, S, d)."""
    q = q_ref[...].astype(jnp.float32) * scale       # fold scale into q (S*d ops, not S*S)
    k = k_ref[...].astype(jnp.float32)
    v = v_ref[...].astype(jnp.float32)
    s = jnp.einsum("bqd,bkd->bqk", q, k, preferred_element_type=jnp.float32)
    m = jnp.max(s, axis=-1, keepdims=True)
    e = jnp.exp(s - m)
    denom = jnp.sum(e, axis=-1, keepdims=True)
    p = e * pl.reciprocal(denom, approx=True)        # EUP reciprocal (free slot)
    attn_ref[...] = p                                # softmax over dim=2
    ctx_ref[...] = jnp.einsum("bqk,bkd->bqd", p, v, preferred_element_type=jnp.float32)


def _tail_kernel(ctx_ref, res_ref, wf1_ref, wf2_ref, ln1_g_ref, ln1_b_ref,
                 cw1_ref, cb1_ref, cw2_ref, cb2_ref, ln2_g_ref, ln2_b_ref,
                 o_ref, *, eps):
    """Fused: output-proj KAN + add + LN1 + FFN (conv1x1, ReLU, conv1x1) + add + LN2."""
    def layernorm(y, g, b):
        mu = jnp.mean(y, axis=-1, keepdims=True)
        var = jnp.mean((y - mu) ** 2, axis=-1, keepdims=True)
        return (y - mu) * jax.lax.rsqrt(var + eps) * g + b

    ctx = ctx_ref[...].astype(jnp.float32)
    res = res_ref[...].astype(jnp.float32)

    # final KANLinear projection
    silu = ctx * (1.0 / (1.0 + jnp.exp(-ctx)))
    lrelu = jnp.where(ctx >= 0.0, ctx, 0.01 * ctx)
    out = (jnp.dot(silu, wf1_ref[...], preferred_element_type=jnp.float32)
           + jnp.dot(lrelu, wf2_ref[...], preferred_element_type=jnp.float32))

    # dropout == identity (eval); residual add + LayerNorm 1
    attn_out = layernorm(out + res, ln1_g_ref[...], ln1_b_ref[...])

    # PositionalWiseFeedForward: 1x1 Conv1d pair == per-position linear, ReLU between
    h = jnp.maximum(
        jnp.dot(attn_out, cw1_ref[...], preferred_element_type=jnp.float32) + cb1_ref[...],
        0.0)
    ffn = jnp.dot(h, cw2_ref[...], preferred_element_type=jnp.float32) + cb2_ref[...]

    # dropout == identity; residual add + LayerNorm 2
    o_ref[...] = layernorm(ffn + attn_out, ln2_g_ref[...], ln2_b_ref[...])


# ----------------------------- kernel wrappers -----------------------------

def fused_qkv_projection(x2d, wqkv1, wqkv2, *, row_block=None):
    n, d = x2d.shape
    out_f = wqkv1.shape[1]
    if row_block is None or row_block >= n:
        row_block = n
    assert n % row_block == 0
    row = lambda i: (i, 0)
    bcast = lambda i: (0, 0)
    return pl.pallas_call(
        _qkv_kan_kernel,
        grid=(n // row_block,),
        in_specs=[
            pl.BlockSpec((row_block, d), row),
            pl.BlockSpec((d, out_f), bcast),
            pl.BlockSpec((d, out_f), bcast),
        ],
        out_specs=pl.BlockSpec((row_block, out_f), row),
        out_shape=jax.ShapeDtypeStruct((n, out_f), jnp.float32),
        compiler_params=pltpu.CompilerParams(dimension_semantics=("parallel",)),
    )(x2d, wqkv1, wqkv2)


def multi_head_attention(q, k, v, scale):
    bh, s, d = q.shape
    ctx, attn = pl.pallas_call(
        functools.partial(_attention_kernel, scale=scale),
        out_shape=[
            jax.ShapeDtypeStruct((bh, s, d), jnp.float32),
            jax.ShapeDtypeStruct((bh, s, s), jnp.float32),
        ],
    )(q, k, v)
    return ctx, attn


def fused_tail(ctx2d, res2d, prep, *, eps=1e-5, row_block=None):
    n, d = ctx2d.shape
    hd = prep["cw1_t"].shape[1]
    if row_block is None or row_block >= n:
        row_block = n
    assert n % row_block == 0
    row = lambda i: (i, 0)
    bcast = lambda i: (0, 0)
    return pl.pallas_call(
        functools.partial(_tail_kernel, eps=eps),
        grid=(n // row_block,),
        in_specs=[
            pl.BlockSpec((row_block, d), row),    # context
            pl.BlockSpec((row_block, d), row),    # residual (layer input)
            pl.BlockSpec((d, d), bcast),          # wf1^T
            pl.BlockSpec((d, d), bcast),          # wf2^T
            pl.BlockSpec((1, d), bcast),          # ln1 gamma
            pl.BlockSpec((1, d), bcast),          # ln1 beta
            pl.BlockSpec((d, hd), bcast),         # conv w1^T
            pl.BlockSpec((1, hd), bcast),         # conv b1
            pl.BlockSpec((hd, d), bcast),         # conv w2^T
            pl.BlockSpec((1, d), bcast),          # conv b2
            pl.BlockSpec((1, d), bcast),          # ln2 gamma
            pl.BlockSpec((1, d), bcast),          # ln2 beta
        ],
        out_specs=pl.BlockSpec((row_block, d), row),
        out_shape=jax.ShapeDtypeStruct((n, d), jnp.float32),
        compiler_params=pltpu.CompilerParams(dimension_semantics=("parallel",)),
    )(ctx2d, res2d, prep["wf1_t"], prep["wf2_t"], prep["ln1_g"], prep["ln1_b"],
      prep["cw1_t"], prep["cb1"], prep["cw2_t"], prep["cb2"],
      prep["ln2_g"], prep["ln2_b"])


# --------------------------- full forward (glue) ---------------------------

def prepare_inference_params(params):
    """One-time host-side prep: concat Q/K/V KAN weights and pre-transpose every
    weight matrix so kernels contract on the natural (lane-dense) axis."""
    return {
        "num_heads": params["num_heads"],
        "wqkv1": jnp.concatenate(
            [params["wq1"].T, params["wk1"].T, params["wv1"].T], axis=1),
        "wqkv2": jnp.concatenate(
            [params["wq2"].T, params["wk2"].T, params["wv2"].T], axis=1),
        "wf1_t": params["wf1"].T, "wf2_t": params["wf2"].T,
        "ln1_g": params["ln1_g"], "ln1_b": params["ln1_b"],
        "cw1_t": params["cw1"].T, "cb1": params["cb1"],
        "cw2_t": params["cw2"].T, "cb2": params["cb2"],
        "ln2_g": params["ln2_g"], "ln2_b": params["ln2_b"],
    }


def attention_layer_forward(prep, x):
    B, S, D = x.shape
    H = prep["num_heads"]
    dph = D // H
    x2d = x.reshape(-1, D)

    # (1) fused Q/K/V KAN projections  -> (B*S, 3*D)
    qkv = fused_qkv_projection(x2d, prep["wqkv1"], prep["wqkv2"])
    q2d, k2d, v2d = qkv[:, :D], qkv[:, D:2 * D], qkv[:, 2 * D:]

    # raw row-major .view(B*H, -1, dph), exactly as the PyTorch code
    # (kept in the wrapper: this lane-dim-changing reshape is free in XLA and
    #  avoids an in-kernel relayout)
    q = q2d.reshape(B * H, S, dph)
    k = k2d.reshape(B * H, S, dph)
    v = v2d.reshape(B * H, S, dph)

    scale = float(dph // H) ** (-0.5)

    # (2) all-heads attention in one kernel step
    ctx, attention = multi_head_attention(q, k, v, scale)

    # (3) fused output KAN + LN1 + FFN + LN2
    ctx2d = ctx.reshape(B * S, D)
    out2d = fused_tail(ctx2d, x2d, prep)
    return out2d.reshape(B, S, D), attention


# ----------------------------- pure-JAX reference -----------------------------

def _reference_forward(params, x):
    def kan(x2, w1, w2):
        silu = x2 * jax.nn.sigmoid(x2)
        lrelu = jnp.where(x2 >= 0, x2, 0.01 * x2)
        return silu @ w1.T + lrelu @ w2.T

    def ln(y, g, b, eps=1e-5):
        mu = jnp.mean(y, -1, keepdims=True)
        var = jnp.mean((y - mu) ** 2, -1, keepdims=True)
        return (y - mu) / jnp.sqrt(var + eps) * g + b

    B, S, D = x.shape
    H = params["num_heads"]
    dph = D // H
    x2 = x.reshape(-1, D)
    k = kan(x2, params["wk1"], params["wk2"]).reshape(B * H, S, dph)
    v = kan(x2, params["wv1"], params["wv2"]).reshape(B * H, S, dph)
    q = kan(x2, params["wq1"], params["wq2"]).reshape(B * H, S, dph)
    scale = float(dph // H) ** (-0.5)
    s = jnp.einsum("bij,bkj->bik", q, k) * scale
    p = jax.nn.softmax(s, axis=2)
    ctx = jnp.einsum("bik,bkd->bid", p, v).reshape(B, S, D)
    out = kan(ctx.reshape(-1, D), params["wf1"], params["wf2"])
    attn_out = ln(out + x.reshape(-1, D), params["ln1_g"], params["ln1_b"])
    h = jnp.maximum(attn_out @ params["cw1"].T + params["cb1"], 0.0)
    ffn = h @ params["cw2"].T + params["cb2"]
    output = ln(ffn + attn_out, params["ln2_g"], params["ln2_b"]).reshape(B, S, D)
    return output, p


# --------------------------------- main ---------------------------------

def _make_params(key, n_feature, num_heads, hid_dim):
    ks = jax.random.split(key, 12)
    D, Hd = n_feature, hid_dim

    def u(k, shape, fan_in):
        bound = 1.0 / jnp.sqrt(fan_in)
        return jax.random.uniform(k, shape, jnp.float32, -bound, bound)

    return {
        "num_heads": num_heads,
        # KANEfficient linears (base_weight_1 / base_weight_2), no bias
        "wk1": u(ks[0], (D, D), D), "wk2": u(ks[1], (D, D), D),
        "wv1": u(ks[2], (D, D), D), "wv2": u(ks[3], (D, D), D),
        "wq1": u(ks[4], (D, D), D), "wq2": u(ks[5], (D, D), D),
        "wf1": u(ks[6], (D, D), D), "wf2": u(ks[7], (D, D), D),
        # MHA LayerNorm (PyTorch default init)
        "ln1_g": jnp.ones((1, D), jnp.float32), "ln1_b": jnp.zeros((1, D), jnp.float32),
        # PositionalWiseFeedForward: 1x1 Conv1d weights squeezed to 2-D + biases
        "cw1": u(ks[8], (Hd, D), D), "cb1": u(ks[9], (1, Hd), D),
        "cw2": u(ks[10], (D, Hd), Hd), "cb2": u(ks[11], (1, D), Hd),
        # FFN LayerNorm
        "ln2_g": jnp.ones((1, D), jnp.float32), "ln2_b": jnp.zeros((1, D), jnp.float32),
    }
    # TODO(synk): spline_weight / spline_scaler / grid buffers of KANLinear are
    # not used by forward(), so they are intentionally not materialized.


if __name__ == "__main__":
    n_feature, num_heads, hid_dim = 32, 4, 64
    B, S = 2, 8

    key = jax.random.PRNGKey(0)
    pkey, xkey = jax.random.split(key)
    params = _make_params(pkey, n_feature, num_heads, hid_dim)
    prep = prepare_inference_params(params)
    x = jax.random.normal(xkey, (B, S, n_feature), jnp.float32)

    out, attn = attention_layer_forward(prep, x)
    out = jax.block_until_ready(out)
    attn = jax.block_until_ready(attn)

    ref_out, ref_attn = _reference_forward(params, x)
    assert out.shape == (B, S, n_feature)
    assert attn.shape == (B * num_heads, S, S)
    # tolerances account for the approximate (EUP) reciprocal in the softmax
    assert jnp.allclose(attn, ref_attn, atol=1e-3, rtol=1e-3)
    assert jnp.allclose(out, ref_out, atol=2e-3, rtol=2e-3)

    print("KERNEL_OK")
</pallas_src>

<mosaic_0001>
module attributes {stable_mosaic.version = 11 : i64} {
  func.func @_qkv_kan_kernel(%arg0: i32, %arg1: memref<16x32xf32, #tpu.memory_space<vmem>>, %arg2: memref<32x96xf32, #tpu.memory_space<vmem>>, %arg3: memref<32x96xf32, #tpu.memory_space<vmem>>, %arg4: memref<16x96xf32, #tpu.memory_space<vmem>>) attributes {dimension_semantics = [#tpu.dimension_semantics<parallel>], iteration_bounds = array<i64: 1>, scalar_prefetch = 0 : i64, scratch_operands = 0 : i64, tpu.core_type = #tpu.core_type<tc>, window_params = [{transform_indices = @transform_0, window_bounds = array<i64: 16, 32>}, {pipeline_mode = #tpu.pipeline_mode<synchronous>, transform_indices = @transform_1, window_bounds = array<i64: 32, 96>}, {pipeline_mode = #tpu.pipeline_mode<synchronous>, transform_indices = @transform_2, window_bounds = array<i64: 32, 96>}, {transform_indices = @transform_3, window_bounds = array<i64: 16, 96>}]} {
    %c0 = arith.constant 0 : index
    %c0_0 = arith.constant 0 : index
    %0 = vector.load %arg1[%c0, %c0_0] : memref<16x32xf32, #tpu.memory_space<vmem>>, vector<16x32xf32>
    %cst = arith.constant 0.000000e+00 : f32
    %1 = vector.broadcast %cst : f32 to vector<16x32xf32>
    %2 = arith.subf %1, %0 : vector<16x32xf32>
    %3 = math.exp %2 : vector<16x32xf32>
    %cst_1 = arith.constant 1.000000e+00 : f32
    %4 = vector.broadcast %cst_1 : f32 to vector<16x32xf32>
    %5 = arith.addf %4, %3 : vector<16x32xf32>
    %cst_2 = arith.constant 1.000000e+00 : f32
    %6 = vector.broadcast %cst_2 : f32 to vector<16x32xf32>
    %7 = arith.divf %6, %5 : vector<16x32xf32>
    %8 = arith.mulf %0, %7 : vector<16x32xf32>
    %cst_3 = arith.constant 0.000000e+00 : f32
    %9 = vector.broadcast %cst_3 : f32 to vector<16x32xf32>
    %10 = arith.cmpf oge, %0, %9 : vector<16x32xf32>
    %cst_4 = arith.constant 0.00999999977 : f32
    %11 = vector.broadcast %cst_4 : f32 to vector<16x32xf32>
    %12 = arith.mulf %11, %0 : vector<16x32xf32>
    %13 = arith.select %10, %0, %12 : vector<16x32xi1>, vector<16x32xf32>
    %c0_5 = arith.constant 0 : index
    %c0_6 = arith.constant 0 : index
    %14 = vector.load %arg2[%c0_5, %c0_6] : memref<32x96xf32, #tpu.memory_space<vmem>>, vector<32x96xf32>
    %cst_7 = arith.constant dense<0.000000e+00> : vector<16x96xf32>
    %15 = tpu.matmul %8, %14, %cst_7 {dimension_numbers = #tpu.dot_dimension_numbers<[1], [0], [0], [1], [0, 0, 1, 1], [], []>} : vector<16x32xf32>, vector<32x96xf32>, vector<16x96xf32> -> vector<16x96xf32>
    %c0_8 = arith.constant 0 : index
    %c0_9 = arith.constant 0 : index
    %16 = vector.load %arg3[%c0_8, %c0_9] : memref<32x96xf32, #tpu.memory_space<vmem>>, vector<32x96xf32>
    %cst_10 = arith.constant dense<0.000000e+00> : vector<16x96xf32>
    %17 = tpu.matmul %13, %16, %cst_10 {dimension_numbers = #tpu.dot_dimension_numbers<[1], [0], [0], [1], [0, 0, 1, 1], [], []>} : vector<16x32xf32>, vector<32x96xf32>, vector<16x96xf32> -> vector<16x96xf32>
    %18 = arith.addf %15, %17 : vector<16x96xf32>
    %c0_11 = arith.constant 0 : index
    %c0_12 = arith.constant 0 : index
    %19 = vector.load %arg4[%c0_11, %c0_12] : memref<16x96xf32, #tpu.memory_space<vmem>>, vector<16x96xf32>
    tpu.vector_store %arg4[%c0_11, %c0_12], %18 {strides = array<i32>} : memref<16x96xf32, #tpu.memory_space<vmem>>, vector<16x96xf32>,
    return
  }
  func.func @transform_0(%arg0: i32) -> (i32, i32) {
    %c0_i32 = arith.constant 0 : i32
    %c0_i32_0 = arith.constant 0 : i32
    return %arg0, %c0_i32 : i32, i32
  }
  func.func @transform_1(%arg0: i32) -> (i32, i32) {
    %c0_i32 = arith.constant 0 : i32
    %c0_i32_0 = arith.constant 0 : i32
    %c0_i32_1 = arith.constant 0 : i32
    return %c0_i32, %c0_i32_0 : i32, i32
  }
  func.func @transform_2(%arg0: i32) -> (i32, i32) {
    %c0_i32 = arith.constant 0 : i32
    %c0_i32_0 = arith.constant 0 : i32
    %c0_i32_1 = arith.constant 0 : i32
    return %c0_i32, %c0_i32_0 : i32, i32
  }
  func.func @transform_3(%arg0: i32) -> (i32, i32) {
    %c0_i32 = arith.constant 0 : i32
    %c0_i32_0 = arith.constant 0 : i32
    return %arg0, %c0_i32 : i32, i32
  }
}

</mosaic_0001>

<bundles_post_ra>
// kernel: tpu_custom_call.1
= control target key start
LH: loop header
LB: loop body
LE: loop exit
PB: predicated region body
PF: predicated region fallthrough
CT: control target
= control target key end

     0   :  { %8 = vsyncpa [#allocation3], 0  ;;  %s389_s0 = inlined_call_operand.hbm [shape: f32[16,32], index: 0, kind: input, shape index: {}]   ;;  %s390_s1 = inlined_call_operand.hbm [shape: f32[32,96], index: 1, kind: input, shape index: {}]   ;;  %s391_s2 = inlined_call_operand.hbm [shape: f32[32,96], index: 2, kind: input, shape index: {}]   ;;  %s392_s3 = inlined_call_operand.hbm [shape: f32[16,96], index: 3, kind: output, shape index: {}]  }
   0x1   :  { %9 = vsyncpa [#allocation6], 0 }
   0x2   :  { %10 = vsyncpa [#allocation4], 0  ;;  %s28_s14 = sshll.u32 %s390_s1, 4  ;;  %s328_s15 = smov [#allocation5]   ;;  %s29_s14 = int_to_ptr.hbm [resolvable:$true] %s28_s14 }
   0x3   :  { %s30_s16 = sshll.u32 %s328_s15, 4  ;;  %s15_s19 = sshll.u32 %s389_s0, 4  ;;  %s31_s16 = int_to_ptr.vmem [resolvable:$true] %s30_s16  ;;  %s16_s19 = int_to_ptr.hbm [resolvable:$true] %s15_s19 }
   0x4   :  { %s329_s20 = smov 128   ;;  %s330_s21 = smov 8  }
   0x5   :  { %36 = dma.hbm_to_vmem [thread:$0]  %s29_s14, 512, %s31_s16, [#allocation6], %s329_s20, %s329_s20, %s330_s21  }
   0x6   :  { %s331_s22 = smov [#allocation2]   ;;  %s41_s1 = sshll.u32 %s391_s2, 4  ;;  %s42_s1 = int_to_ptr.hbm [resolvable:$true] %s41_s1 }
   0x7   :  { %s17_s23 = sshll.u32 %s331_s22, 4  ;;  %s332_s0 = smov [#allocation7]   ;;  %s18_s23 = int_to_ptr.vmem [resolvable:$true] %s17_s23 }
   0x8   :  { %23 = dma.hbm_to_vmem [thread:$0]  %s16_s19, 256, %s18_s23, [#allocation3], %s329_s20, %s329_s20, %s330_s21  }
   0x9   :  { %s43_s26 = sshll.u32 %s332_s0, 4  ;;  %s44_s26 = int_to_ptr.vmem [resolvable:$true] %s43_s26 }
   0xa   :  { %49 = dma.hbm_to_vmem [thread:$0]  %s42_s1, 512, %s44_s26, [#allocation6], %s329_s20, %s329_s20, %s330_s21  }
   0xb   :  { %322 = dma.done.wait [#allocation3], 256  }
   0xc   :  { %323 = vsyncadd [#allocation3], 4294967040 }
   0xd   :  { %324 = dma.done.wait [#allocation6], 1024  }
   0xe   :  { %325 = vsyncadd [#allocation6], 4294966272  ;;  %v117_v0 = vld [vmem:[#allocation7 + $0x18] sm:$0xff]  ;;  %v116_v2 = vld [vmem:[#allocation7 + $0x10] sm:$0xff]  ;;  %vm118_vm2 = vcmask 261120   ;;  %vm177_vm11 = vcmask 785408  }
   0xf   :  { %v113_v1 = vld [vmem:[#allocation5 + $0x18] sm:$0xff]  ;;  %204 = vmatpush.msra.mxu2 %v117_v0  ;;  %v112_v3 = vld [vmem:[#allocation5 + $0x10] sm:$0xff]  ;;  %v115_v4 = vld [vmem:[#allocation7 + $0x8] sm:$0xff]  ;;  %137 = vmatpush.msra.mxu0 %v117_v0  ;;  %s333_s2 = smov [#allocation8]   ;;  %s186_s30 = sshll.u32 %s392_s3, 4  ;;  %s187_s30 = int_to_ptr.hbm [resolvable:$true] %s186_s30 }
  0x10   :  { %208 = vmatpush.msra.mxu3 %v113_v1  ;;  %v111_v5 = vld [vmem:[#allocation5 + $0x8] sm:$0xff]  ;;  %166 = vmatpush.msra.mxu1 %v113_v1  ;;  %v372_v6 = vld [vmem:[#allocation2 + $0x8] sm:$0xff]  ;;  %v62_v9 = vld [vmem:[#allocation2] sm:$0xff]  ;;  %s184_s27 = sshll.u32 %s333_s2, 4  ;;  %s185_s27 = int_to_ptr.vmem [resolvable:$true] %s184_s27 }
  0x11   :  { %205 = vmatpush.msra.mxu2 %v116_v2  ;;  %v65_v7 = vsub.f32 0.0, %v372_v6  ;;  %vm105_vm0 = vcmp.ge.f32.partialorder %v372_v6, 0.0  ;;  %v107_v8 = vmul.f32 0.01, %v372_v6  ;;  %v114_v10 = vld [vmem:[#allocation7] sm:$0xff]  ;;  %138 = vmatpush.msra.mxu0 %v116_v2  ;;  %v64_v12 = vsub.f32 0.0, %v62_v9 }
  0x12   :  { %209 = vmatpush.msra.mxu3 %v112_v3  ;;  %v110_v11 = vld [vmem:[#allocation5] sm:$0xff]  ;;  %167 = vmatpush.msra.mxu1 %v112_v3  ;;  %vm104_vm1 = vcmp.ge.f32.partialorder %v62_v9, 0.0  ;;  %v106_v13 = vmul.f32 0.01, %v62_v9 }
  0x13   :  { %206 = vmatpush.msra.mxu2 %v115_v4  ;;  %v68_v14 = vmul.f32 1.442695, %v65_v7  ;;  %v109_v15 = vsel %vm105_vm0, %v372_v6, %v107_v8  ;;  %139 = vmatpush.msra.mxu0 %v115_v4  ;;  %v66_v16 = vmul.f32 1.442695, %v64_v12 }
  0x14   :  { %210 = vmatpush.msra.mxu3 %v111_v5  ;;  %168 = vmatpush.msra.mxu1 %v111_v5  ;;  %v108_v17 = vsel %vm104_vm1, %v62_v9, %v106_v13 }
  0x15   :  { %207 = vmatpush.msra.mxu2 %v114_v10  ;;  %218 = vpow2.f32 %v68_v14  ;;  %140 = vmatpush.msra.mxu0 %v114_v10 }
  0x16   :  { %211 = vmatpush.msra.mxu3 %v110_v11  ;;  %201 = vmatmul.msk.f32.vlgmr.msra.gmra.mxu2 %vm118_vm2, %v109_v15  ;;  %220 = vpow2.f32 %v66_v16 }
  0x17   :  { %169 = vmatpush.msra.mxu1 %v110_v11  ;;  %200 = vmatmul.msk.f32.vlgmr.msra.gmra.mxu0 %vm118_vm2, %v108_v17 }
  0x1b   :  { %v219_v18 = vpop.eup %218 }
  0x1c   :  { %v221_v19 = vpop.eup %220  ;;  %v71_v20 = vadd.f32 1.0, %v219_v18 }
  0x1d   :  { %v70_v21 = vadd.f32 1.0, %v221_v19 }
  0x1e   :  { %222 = vrcp.f32 %v71_v20  ;;  %vm92_vm3 = vweird.f32 %v71_v20  ;;  %v98_v25 = vand.u32 2147483648, %v71_v20  ;;  %v96_v28 = vand.u32 2147483647, %v71_v20 }
  0x1f   :  { %224 = vrcp.f32 %v70_v21  ;;  %v83_v29 = vand.u32 2147483648, %v70_v21  ;;  %vm77_vm5 = vweird.f32 %v70_v21  ;;  %v81_v31 = vand.u32 2147483647, %v70_v21 }
  0x20   :  { %v99_v33 = vor.u32 1.1754944e-38, %v98_v25  ;;  %vm97_vm8 = vcmp.eq.f32.partialorder %v96_v28, 8.507059e+37 }
  0x21   :  { %v84_v36 = vor.u32 1.1754944e-38, %v83_v29  ;;  %vm82_vm10 = vcmp.eq.f32.partialorder %v81_v31, 8.507059e+37 }
  0x24   :  { %v223_v22 = vpop.eup %222 }
  0x25   :  { %v225_v23 = vpop.eup %224  ;;  %v88_v24 = vmul.f32 %v223_v22, %v71_v20  ;;  %vm93_vm4 = vweird.f32 %v223_v22 }
  0x26   :  { %v73_v26 = vmul.f32 %v225_v23, %v70_v21  ;;  %vm78_vm6 = vweird.f32 %v225_v23  ;;  %vm94_vm7 = vmor %vm92_vm3, %vm93_vm4 }
  0x27   :  { %v89_v27 = vsub.f32 1.0, %v88_v24  ;;  %vm79_vm9 = vmor %vm77_vm5, %vm78_vm6 }
  0x28   :  { %v74_v30 = vsub.f32 1.0, %v73_v26 }
  0x29   :  { %v90_v32 = vmul.f32 %v223_v22, %v89_v27 }
  0x2a   :  { %v75_v34 = vmul.f32 %v225_v23, %v74_v30 }
  0x2b   :  { %v91_v35 = vadd.f32 %v223_v22, %v90_v32 }
  0x2c   :  { %v76_v37 = vadd.f32 %v225_v23, %v75_v34 }
  0x2d   :  { %v95_v38 = vsel %vm94_vm7, %v223_v22, %v91_v35 }
  0x2e   :  { %v100_v39 = vsel %vm97_vm8, %v99_v33, %v95_v38  ;;  %v80_v40 = vsel %vm79_vm9, %v225_v23, %v76_v37 }
  0x2f   :  { %v103_v41 = vmul.f32 %v100_v39, %v372_v6  ;;  %v85_v42 = vsel %vm82_vm10, %v84_v36, %v80_v40 }
  0x30   :  { %v102_v43 = vmul.f32 %v85_v42, %v62_v9 }
  0x31   :  { %203 = vmatmul.msk.f32.vlgmr.msra.gmra.mxu3 %vm118_vm2, %v103_v41 }
  0x32   :  { %202 = vmatmul.msk.f32.vlgmr.msra.gmra.mxu1 %vm118_vm2, %v102_v43 }
  0x94   :  { %v142_v44 = vpop.f32.mrf.mxu0 }
  0x99   :  { %v145_v47 = vpop.f32.mrf.mxu2 }
  0xaf   :  { %v171_v45 = vpop.f32.mrf.mxu1 }
  0xb0   :  { %v172_v46 = vadd.f32 %v171_v45, %v142_v44 }
  0xb2   :  { %178 = vst.msk [vmem:[#allocation8] sm:$0xff] %vm177_vm11, %v172_v46 }
  0xb4   :  { %v174_v48 = vpop.f32.mrf.mxu3 }
  0xb5   :  { %v175_v49 = vadd.f32 %v174_v48, %v145_v47 }
  0xb7   :  { %179 = vst.msk [vmem:[#allocation8 + $0x8] sm:$0xff] %vm177_vm11, %v175_v49 }
  0xb8   :  { %192 = dma.vmem_to_hbm [thread:$0]  %s185_s27, 256, %s187_s30, [#allocation4], %s329_s20, %s329_s20, %s330_s21  }
  0xb9   :  { %326 = dma.done.wait [#allocation4], 256  }
  0xba   :  { %327 = vsyncadd [#allocation4], 4294967040 }
  0xbb   :  { %197 = vsyncpa [#allocation3], 1 }
  0xbc   :  { %198 = vsyncpa [#allocation6], 1 }
  0xbd   :  { %199 = vsyncpa [#allocation4], 1 }

</bundles_post_ra>
